<compile_context>
chip_gen: v6e
topology: v6e:2x2x1
jax: 0.10.0
libtpu: 0.0.40
codegen_flags: <defaults>
</compile_context>

<pallas_src>
import jax
import jax.numpy as jnp
from jax.experimental import pallas as pl
from jax.experimental.pallas import tpu as pltpu

HIDDEN_SIZE = 20
INPUT_SIZE = 5
OUTPUT_SIZE = 1

H_PAD = 128     # hidden features padded to one lane width (VMEM/vregs only)
SUBLANE = 8
TILE_B = 512    # batch rows per grid step (multiple of 8)


def _round_up(n, m):
    return ((n + m - 1) // m) * m


def _bp_kernel(x_ref, w1_ref, b1_ref, w2_ref, b2_ref, w3_ref, b3_ref,
               w4t_ref, b4_ref, o_ref):
    x = x_ref[...]                                   # (tb, 5)

    # Layer 1: in_features = 5 is far below MXU granularity -> do it as 5
    # broadcast multiply-adds on the VPU (zero-padded columns stay exactly 0).
    h = x[:, 0:1] * w1_ref[0:1, :] + b1_ref[...]      # (tb, 128)
    for k in range(1, INPUT_SIZE):
        h = h + x[:, k:k + 1] * w1_ref[k:k + 1, :]
    h = jnp.maximum(h, 0.0)

    # Layers 2 and 3: 128x128 padded weights, MXU matmuls, f32 accumulation.
    h = jnp.dot(h, w2_ref[...], preferred_element_type=jnp.float32) + b2_ref[...]
    h = jnp.maximum(h, 0.0)
    h = jnp.dot(h, w3_ref[...], preferred_element_type=jnp.float32) + b3_ref[...]
    h = jnp.maximum(h, 0.0)

    # Layer 4: out_features = 1 -> lane reduction on the XLU instead of MXU.
    out = jnp.sum(h * w4t_ref[...], axis=-1, keepdims=True) + b4_ref[...]
    o_ref[...] = out.astype(o_ref.dtype)


def _pad_2d(a, rows, cols):
    r, c = a.shape
    return jnp.pad(a, ((0, rows - r), (0, cols - c)))


def prepare_params(params):
    """Pad weights/biases ONCE, outside the per-call forward.

    Weights are stored (in_features, out_features), i.e. PyTorch's weight.T.
    Zero padding is exact: padded rows/cols/bias entries contribute nothing.
    """
    (w1, b1), (w2, b2), (w3, b3), (w4, b4) = params
    w1p = _pad_2d(w1, INPUT_SIZE, H_PAD)          # (5, 40)   -> (5, 128)
    w2p = _pad_2d(w2, H_PAD, H_PAD)               # (40, 40)  -> (128, 128)
    w3p = _pad_2d(w3, H_PAD, H_PAD)               # (40, 20)  -> (128, 128)
    w4tp = _pad_2d(w4.T, 1, H_PAD)                # (20, 1).T -> (1, 128)
    b1p = _pad_2d(b1.reshape(1, -1), 1, H_PAD)
    b2p = _pad_2d(b2.reshape(1, -1), 1, H_PAD)
    b3p = _pad_2d(b3.reshape(1, -1), 1, H_PAD)
    b4p = b4.reshape(1, 1)                        # (1, 1) scalar
    return (w1p, b1p, w2p, b2p, w3p, b3p, w4tp, b4p)


@jax.jit
def bp_model_forward(x, padded_params):
    """x: (B, INPUT_SIZE) float32 -> (B, OUTPUT_SIZE) float32."""
    w1p, b1p, w2p, b2p, w3p, b3p, w4tp, b4p = padded_params
    B = x.shape[0]

    # Batch tile: multiple of 8, capped at TILE_B.  Non-divisible batches are
    # handled by Pallas partial blocks (OOB output rows are dropped).
    tb = min(TILE_B, _round_up(max(B, 1), SUBLANE))
    grid = (pl.cdiv(B, tb),)

    const = lambda shape: pl.BlockSpec(shape, lambda i: (0, 0))

    out = pl.pallas_call(
        _bp_kernel,
        out_shape=jax.ShapeDtypeStruct((B, OUTPUT_SIZE), jnp.float32),
        grid=grid,
        in_specs=[
            pl.BlockSpec((tb, INPUT_SIZE), lambda i: (i, 0)),  # x tile
            const((INPUT_SIZE, H_PAD)),   # w1  (VMEM-resident across steps)
            const((1, H_PAD)),            # b1
            const((H_PAD, H_PAD)),        # w2
            const((1, H_PAD)),            # b2
            const((H_PAD, H_PAD)),        # w3
            const((1, H_PAD)),            # b3
            const((1, H_PAD)),            # w4^T
            const((1, 1)),                # b4
        ],
        out_specs=pl.BlockSpec((tb, OUTPUT_SIZE), lambda i: (i, 0)),
        compiler_params=pltpu.CompilerParams(
            dimension_semantics=("parallel",)),   # megacore sharding on v7x
    )(x, w1p, b1p, w2p, b2p, w3p, b3p, w4tp, b4p)

    return out


def init_params(key):
    """Deterministic init mirroring nn.Linear default (U[-1/sqrt(fan_in), +])."""
    dims = [(INPUT_SIZE, HIDDEN_SIZE * 2),
            (HIDDEN_SIZE * 2, HIDDEN_SIZE * 2),
            (HIDDEN_SIZE * 2, HIDDEN_SIZE),
            (HIDDEN_SIZE, OUTPUT_SIZE)]
    params = []
    for (fan_in, fan_out) in dims:
        key, kw, kb = jax.random.split(key, 3)
        bound = 1.0 / jnp.sqrt(fan_in)
        # Stored as (in, out); equals PyTorch weight.T
        w = jax.random.uniform(kw, (fan_in, fan_out), jnp.float32, -bound, bound)
        b = jax.random.uniform(kb, (fan_out,), jnp.float32, -bound, bound)
        params.append((w, b))
    return params


def reference_forward(x, params):
    h = x
    for i, (w, b) in enumerate(params):
        h = h @ w + b
        if i < len(params) - 1:
            h = jnp.maximum(h, 0.0)
    return h


if __name__ == "__main__":
    key = jax.random.PRNGKey(0)
    kp, kx, kx2, kx3 = jax.random.split(key, 4)
    params = init_params(kp)
    padded = prepare_params(params)   # pad once, reuse across calls

    # Small batch (single exact tile).
    batch = 8
    x = jax.random.normal(kx, (batch, INPUT_SIZE), jnp.float32)
    y = bp_model_forward(x, padded)
    jax.block_until_ready(y)
    y_ref = reference_forward(x, params)
    assert y.shape == (batch, OUTPUT_SIZE), y.shape
    assert jnp.allclose(y, y_ref, atol=1e-5, rtol=1e-5), (y, y_ref)

    # Batch not a multiple of 8 (single partial block; masked writeback path).
    batch2 = 53
    x2 = jax.random.normal(kx2, (batch2, INPUT_SIZE), jnp.float32)
    y2 = bp_model_forward(x2, padded)
    jax.block_until_ready(y2)
    y2_ref = reference_forward(x2, params)
    assert y2.shape == (batch2, OUTPUT_SIZE), y2.shape
    assert jnp.allclose(y2, y2_ref, atol=1e-5, rtol=1e-5)

    # Larger, non-tile-aligned batch (multi-step grid + partial last block).
    batch3 = 600
    x3 = jax.random.normal(kx3, (batch3, INPUT_SIZE), jnp.float32)
    y3 = bp_model_forward(x3, padded)
    jax.block_until_ready(y3)
    y3_ref = reference_forward(x3, params)
    assert y3.shape == (batch3, OUTPUT_SIZE), y3.shape
    assert jnp.allclose(y3, y3_ref, atol=1e-5, rtol=1e-5)

    print("KERNEL_OK")
</pallas_src>

<mosaic_0001>
module attributes {stable_mosaic.version = 11 : i64} {
  func.func @_bp_kernel(%arg0: i32, %arg1: memref<8x5xf32, #tpu.memory_space<vmem>>, %arg2: memref<5x128xf32, #tpu.memory_space<vmem>>, %arg3: memref<1x128xf32, #tpu.memory_space<vmem>>, %arg4: memref<128x128xf32, #tpu.memory_space<vmem>>, %arg5: memref<1x128xf32, #tpu.memory_space<vmem>>, %arg6: memref<128x128xf32, #tpu.memory_space<vmem>>, %arg7: memref<1x128xf32, #tpu.memory_space<vmem>>, %arg8: memref<1x128xf32, #tpu.memory_space<vmem>>, %arg9: memref<1x1xf32, #tpu.memory_space<vmem>>, %arg10: memref<8x1xf32, #tpu.memory_space<vmem>>) attributes {dimension_semantics = [#tpu.dimension_semantics<parallel>], iteration_bounds = array<i64: 1>, scalar_prefetch = 0 : i64, scratch_operands = 0 : i64, tpu.core_type = #tpu.core_type<tc>, window_params = [{transform_indices = @transform_0, window_bounds = array<i64: 8, 5>}, {pipeline_mode = #tpu.pipeline_mode<synchronous>, transform_indices = @transform_1, window_bounds = array<i64: 5, 128>}, {pipeline_mode = #tpu.pipeline_mode<synchronous>, transform_indices = @transform_2, window_bounds = array<i64: 1, 128>}, {pipeline_mode = #tpu.pipeline_mode<synchronous>, transform_indices = @transform_3, window_bounds = array<i64: 128, 128>}, {pipeline_mode = #tpu.pipeline_mode<synchronous>, transform_indices = @transform_4, window_bounds = array<i64: 1, 128>}, {pipeline_mode = #tpu.pipeline_mode<synchronous>, transform_indices = @transform_5, window_bounds = array<i64: 128, 128>}, {pipeline_mode = #tpu.pipeline_mode<synchronous>, transform_indices = @transform_6, window_bounds = array<i64: 1, 128>}, {pipeline_mode = #tpu.pipeline_mode<synchronous>, transform_indices = @transform_7, window_bounds = array<i64: 1, 128>}, {pipeline_mode = #tpu.pipeline_mode<synchronous>, transform_indices = @transform_8, window_bounds = array<i64: 1, 1>}, {transform_indices = @transform_9, window_bounds = array<i64: 8, 1>}]} {
    %c0 = arith.constant 0 : index
    %c0_0 = arith.constant 0 : index
    %0 = vector.load %arg1[%c0, %c0_0] : memref<8x5xf32, #tpu.memory_space<vmem>>, vector<8x5xf32>
    %1 = vector.extract_strided_slice %0 {offsets = [0, 0], sizes = [8, 1], strides = [1, 1]} : vector<8x5xf32> to vector<8x1xf32>
    %c0_1 = arith.constant 0 : index
    %c0_2 = arith.constant 0 : index
    %2 = vector.load %arg2[%c0_1, %c0_2] : memref<5x128xf32, #tpu.memory_space<vmem>>, vector<1x128xf32>
    %3 = vector.broadcast %1 : vector<8x1xf32> to vector<8x128xf32>
    %4 = vector.broadcast %2 : vector<1x128xf32> to vector<8x128xf32>
    %5 = arith.mulf %3, %4 : vector<8x128xf32>
    %c0_3 = arith.constant 0 : index
    %c0_4 = arith.constant 0 : index
    %6 = vector.load %arg3[%c0_3, %c0_4] : memref<1x128xf32, #tpu.memory_space<vmem>>, vector<1x128xf32>
    %7 = vector.broadcast %6 : vector<1x128xf32> to vector<8x128xf32>
    %8 = arith.addf %5, %7 : vector<8x128xf32>
    %9 = vector.extract_strided_slice %0 {offsets = [0, 1], sizes = [8, 1], strides = [1, 1]} : vector<8x5xf32> to vector<8x1xf32>
    %c1 = arith.constant 1 : index
    %c0_5 = arith.constant 0 : index
    %10 = vector.load %arg2[%c1, %c0_5] : memref<5x128xf32, #tpu.memory_space<vmem>>, vector<1x128xf32>
    %11 = vector.broadcast %9 : vector<8x1xf32> to vector<8x128xf32>
    %12 = vector.broadcast %10 : vector<1x128xf32> to vector<8x128xf32>
    %13 = arith.mulf %11, %12 : vector<8x128xf32>
    %14 = arith.addf %8, %13 : vector<8x128xf32>
    %15 = vector.extract_strided_slice %0 {offsets = [0, 2], sizes = [8, 1], strides = [1, 1]} : vector<8x5xf32> to vector<8x1xf32>
    %c2 = arith.constant 2 : index
    %c0_6 = arith.constant 0 : index
    %16 = vector.load %arg2[%c2, %c0_6] : memref<5x128xf32, #tpu.memory_space<vmem>>, vector<1x128xf32>
    %17 = vector.broadcast %15 : vector<8x1xf32> to vector<8x128xf32>
    %18 = vector.broadcast %16 : vector<1x128xf32> to vector<8x128xf32>
    %19 = arith.mulf %17, %18 : vector<8x128xf32>
    %20 = arith.addf %14, %19 : vector<8x128xf32>
    %21 = vector.extract_strided_slice %0 {offsets = [0, 3], sizes = [8, 1], strides = [1, 1]} : vector<8x5xf32> to vector<8x1xf32>
    %c3 = arith.constant 3 : index
    %c0_7 = arith.constant 0 : index
    %22 = vector.load %arg2[%c3, %c0_7] : memref<5x128xf32, #tpu.memory_space<vmem>>, vector<1x128xf32>
    %23 = vector.broadcast %21 : vector<8x1xf32> to vector<8x128xf32>
    %24 = vector.broadcast %22 : vector<1x128xf32> to vector<8x128xf32>
    %25 = arith.mulf %23, %24 : vector<8x128xf32>
    %26 = arith.addf %20, %25 : vector<8x128xf32>
    %27 = vector.extract_strided_slice %0 {offsets = [0, 4], sizes = [8, 1], strides = [1, 1]} : vector<8x5xf32> to vector<8x1xf32>
    %c4 = arith.constant 4 : index
    %c0_8 = arith.constant 0 : index
    %28 = vector.load %arg2[%c4, %c0_8] : memref<5x128xf32, #tpu.memory_space<vmem>>, vector<1x128xf32>
    %29 = vector.broadcast %27 : vector<8x1xf32> to vector<8x128xf32>
    %30 = vector.broadcast %28 : vector<1x128xf32> to vector<8x128xf32>
    %31 = arith.mulf %29, %30 : vector<8x128xf32>
    %32 = arith.addf %26, %31 : vector<8x128xf32>
    %cst = arith.constant 0.000000e+00 : f32
    %33 = vector.broadcast %cst : f32 to vector<8x128xf32>
    %34 = arith.maximumf %32, %33 : vector<8x128xf32>
    %c0_9 = arith.constant 0 : index
    %c0_10 = arith.constant 0 : index
    %35 = vector.load %arg4[%c0_9, %c0_10] : memref<128x128xf32, #tpu.memory_space<vmem>>, vector<128x128xf32>
    %cst_11 = arith.constant dense<0.000000e+00> : vector<8x128xf32>
    %36 = tpu.matmul %34, %35, %cst_11 {dimension_numbers = #tpu.dot_dimension_numbers<[1], [0], [0], [1], [0, 0, 1, 1], [], []>} : vector<8x128xf32>, vector<128x128xf32>, vector<8x128xf32> -> vector<8x128xf32>
    %c0_12 = arith.constant 0 : index
    %c0_13 = arith.constant 0 : index
    %37 = vector.load %arg5[%c0_12, %c0_13] : memref<1x128xf32, #tpu.memory_space<vmem>>, vector<1x128xf32>
    %38 = vector.broadcast %37 : vector<1x128xf32> to vector<8x128xf32>
    %39 = arith.addf %36, %38 : vector<8x128xf32>
    %cst_14 = arith.constant 0.000000e+00 : f32
    %40 = vector.broadcast %cst_14 : f32 to vector<8x128xf32>
    %41 = arith.maximumf %39, %40 : vector<8x128xf32>
    %c0_15 = arith.constant 0 : index
    %c0_16 = arith.constant 0 : index
    %42 = vector.load %arg6[%c0_15, %c0_16] : memref<128x128xf32, #tpu.memory_space<vmem>>, vector<128x128xf32>
    %cst_17 = arith.constant dense<0.000000e+00> : vector<8x128xf32>
    %43 = tpu.matmul %41, %42, %cst_17 {dimension_numbers = #tpu.dot_dimension_numbers<[1], [0], [0], [1], [0, 0, 1, 1], [], []>} : vector<8x128xf32>, vector<128x128xf32>, vector<8x128xf32> -> vector<8x128xf32>
    %c0_18 = arith.constant 0 : index
    %c0_19 = arith.constant 0 : index
    %44 = vector.load %arg7[%c0_18, %c0_19] : memref<1x128xf32, #tpu.memory_space<vmem>>, vector<1x128xf32>
    %45 = vector.broadcast %44 : vector<1x128xf32> to vector<8x128xf32>
    %46 = arith.addf %43, %45 : vector<8x128xf32>
    %cst_20 = arith.constant 0.000000e+00 : f32
    %47 = vector.broadcast %cst_20 : f32 to vector<8x128xf32>
    %48 = arith.maximumf %46, %47 : vector<8x128xf32>
    %c0_21 = arith.constant 0 : index
    %c0_22 = arith.constant 0 : index
    %49 = vector.load %arg8[%c0_21, %c0_22] : memref<1x128xf32, #tpu.memory_space<vmem>>, vector<1x128xf32>
    %50 = vector.broadcast %49 : vector<1x128xf32> to vector<8x128xf32>
    %51 = arith.mulf %48, %50 : vector<8x128xf32>
    %cst_23 = arith.constant dense<0.000000e+00> : vector<8xf32>
    %52 = vector.multi_reduction <add>, %51, %cst_23 [1] : vector<8x128xf32> to vector<8xf32>
    %53 = vector.shape_cast %52 : vector<8xf32> to vector<8x1xf32>
    %c0_24 = arith.constant 0 : index
    %c0_25 = arith.constant 0 : index
    %54 = vector.load %arg9[%c0_24, %c0_25] : memref<1x1xf32, #tpu.memory_space<vmem>>, vector<1x1xf32>
    %55 = vector.broadcast %54 : vector<1x1xf32> to vector<8x1xf32>
    %56 = arith.addf %53, %55 : vector<8x1xf32>
    %c0_26 = arith.constant 0 : index
    %c0_27 = arith.constant 0 : index
    %57 = vector.load %arg10[%c0_26, %c0_27] : memref<8x1xf32, #tpu.memory_space<vmem>>, vector<8x1xf32>
    tpu.vector_store %arg10[%c0_26, %c0_27], %56 {strides = array<i32>} : memref<8x1xf32, #tpu.memory_space<vmem>>, vector<8x1xf32>,
    return
  }
  func.func @transform_0(%arg0: i32) -> (i32, i32) {
    %c0_i32 = arith.constant 0 : i32
    %c0_i32_0 = arith.constant 0 : i32
    return %arg0, %c0_i32 : i32, i32
  }
  func.func @transform_1(%arg0: i32) -> (i32, i32) {
    %c0_i32 = arith.constant 0 : i32
    %c0_i32_0 = arith.constant 0 : i32
    %c0_i32_1 = arith.constant 0 : i32
    return %c0_i32, %c0_i32_0 : i32, i32
  }
  func.func @transform_2(%arg0: i32) -> (i32, i32) {
    %c0_i32 = arith.constant 0 : i32
    %c0_i32_0 = arith.constant 0 : i32
    %c0_i32_1 = arith.constant 0 : i32
    return %c0_i32, %c0_i32_0 : i32, i32
  }
  func.func @transform_3(%arg0: i32) -> (i32, i32) {
    %c0_i32 = arith.constant 0 : i32
    %c0_i32_0 = arith.constant 0 : i32
    %c0_i32_1 = arith.constant 0 : i32
    return %c0_i32, %c0_i32_0 : i32, i32
  }
  func.func @transform_4(%arg0: i32) -> (i32, i32) {
    %c0_i32 = arith.constant 0 : i32
    %c0_i32_0 = arith.constant 0 : i32
    %c0_i32_1 = arith.constant 0 : i32
    return %c0_i32, %c0_i32_0 : i32, i32
  }
  func.func @transform_5(%arg0: i32) -> (i32, i32) {
    %c0_i32 = arith.constant 0 : i32
    %c0_i32_0 = arith.constant 0 : i32
    %c0_i32_1 = arith.constant 0 : i32
    return %c0_i32, %c0_i32_0 : i32, i32
  }
  func.func @transform_6(%arg0: i32) -> (i32, i32) {
    %c0_i32 = arith.constant 0 : i32
    %c0_i32_0 = arith.constant 0 : i32
    %c0_i32_1 = arith.constant 0 : i32
    return %c0_i32, %c0_i32_0 : i32, i32
  }
  func.func @transform_7(%arg0: i32) -> (i32, i32) {
    %c0_i32 = arith.constant 0 : i32
    %c0_i32_0 = arith.constant 0 : i32
    %c0_i32_1 = arith.constant 0 : i32
    return %c0_i32, %c0_i32_0 : i32, i32
  }
  func.func @transform_8(%arg0: i32) -> (i32, i32) {
    %c0_i32 = arith.constant 0 : i32
    %c0_i32_0 = arith.constant 0 : i32
    %c0_i32_1 = arith.constant 0 : i32
    return %c0_i32, %c0_i32_0 : i32, i32
  }
  func.func @transform_9(%arg0: i32) -> (i32, i32) {
    %c0_i32 = arith.constant 0 : i32
    %c0_i32_0 = arith.constant 0 : i32
    return %arg0, %c0_i32 : i32, i32
  }
}

</mosaic_0001>

<bundles_post_ra>
// kernel: bp_model_forward.1
= control target key start
LH: loop header
LB: loop body
LE: loop exit
PB: predicated region body
PF: predicated region fallthrough
CT: control target
= control target key end

     0   :  { %s711_s0 = inlined_call_operand.hbm [shape: f32[8,5], index: 0, kind: input, shape index: {}]   ;;  %s712_s1 = inlined_call_operand.hbm [shape: f32[5,128], index: 1, kind: input, shape index: {}]   ;;  %s713_s2 = inlined_call_operand.vmem [shape: f32[1,128], index: 2, kind: input, shape index: {}]   ;;  %s714_s3 = inlined_call_operand.hbm [shape: f32[128,128], index: 3, kind: input, shape index: {}]   ;;  %s715_s4 = inlined_call_operand.vmem [shape: f32[1,128], index: 4, kind: input, shape index: {}]   ;;  %s716_s5 = inlined_call_operand.hbm [shape: f32[128,128], index: 5, kind: input, shape index: {}]   ;;  %s717_s6 = inlined_call_operand.vmem [shape: f32[1,128], index: 6, kind: input, shape index: {}]   ;;  %s718_s7 = inlined_call_operand.vmem [shape: f32[1,128], index: 7, kind: input, shape index: {}]   ;;  %s719_s8 = inlined_call_operand.<no memory space> [shape: f32[1,1], index: 8, kind: input, shape index: {}]   ;;  %s720_s9 = inlined_call_operand.vmem [shape: f32[8,1], index: 9, kind: output, shape index: {}]  }
   0x1   :  { %v14_v0 = vstv %s719_s8 }
   0x2   :  { %15 = vst [vmem:[#allocation2] sm:$0x1] %v14_v0 }
   0x3   :  { %16 = vsyncpa [#allocation4], 0 }
   0x4   :  { %17 = vsyncpa [#allocation6], 0 }
   0x5   :  { %18 = vsyncpa [#allocation9], 0  ;;  %s584_s11 = smov [#allocation5]   ;;  %s585_s13 = smov [#allocation3]  }
   0x6   :  { %s35_s12 = sshll.u32 %s584_s11, 4  ;;  %s25_s14 = sshll.u32 %s585_s13, 4  ;;  %s36_s12 = int_to_ptr.vmem [resolvable:$true] %s35_s12  ;;  %s26_s14 = int_to_ptr.vmem [resolvable:$true] %s25_s14 }
   0x7   :  { %s506_s15 = scalar_lea.vmem %s36_s12, 128  ;;  %p511_p1 = scmp.lt.s32.totalorder %s36_s12, %s36_s12 }
   0x8   :  { %p507_p0 = scmp.ne.s32.totalorder %s36_s12, %s506_s15  ;;  %p512_p2 = scmp.lt.s32.totalorder %s506_s15, %s506_s15 }
   0xa   :  { %p513_p3 = por %p512_p2, %p511_p1 }
   0xc   :  { %p514_p4 = pnand %p513_p3, %p507_p0 }
   0xe   :  { %517 = shalt.err (!%p514_p4)
}
   0xf   :  { %38 = dma.hbm_to_vmem [thread:$0]  %s712_s1, 128, %s36_s12, [#allocation6]  }
  0x10   :  { %s526_s8 = scalar_lea.vmem %s26_s14, 128  ;;  %p531_p6 = scmp.lt.s32.totalorder %s26_s14, %s26_s14 }
  0x11   :  { %p527_p5 = scmp.ne.s32.totalorder %s26_s14, %s526_s8  ;;  %p532_p7 = scmp.lt.s32.totalorder %s526_s8, %s526_s8 }
  0x13   :  { %p533_p8 = por %p532_p7, %p531_p6 }
  0x15   :  { %p534_p9 = pnand %p533_p8, %p527_p5 }
  0x17   :  { %537 = shalt.err (!%p534_p9)
}
  0x18   :  { %28 = dma.hbm_to_vmem [thread:$0]  %s711_s0, 128, %s26_s14, [#allocation4]  }
  0x19   :  { %s586_s20 = smov [#allocation7]  }
  0x1a   :  { %s46_s21 = sshll.u32 %s586_s20, 4  ;;  %s47_s21 = int_to_ptr.vmem [resolvable:$true] %s46_s21 }
  0x1b   :  { %s546_s22 = scalar_lea.vmem %s47_s21, 2048  ;;  %p551_p11 = scmp.lt.s32.totalorder %s47_s21, %s47_s21 }
  0x1c   :  { %p547_p10 = scmp.ne.s32.totalorder %s47_s21, %s546_s22  ;;  %p552_p12 = scmp.lt.s32.totalorder %s546_s22, %s546_s22 }
  0x1e   :  { %p553_p13 = por %p552_p12, %p551_p11 }
  0x20   :  { %p554_p0 = pnand %p553_p13, %p547_p10 }
  0x22   :  { %557 = shalt.err (!%p554_p0)
}
  0x23   :  { %s587_s1 = smov 128   ;;  %s588_s23 = smov 8  }
  0x24   :  { %52 = dma.hbm_to_vmem [thread:$0]  %s714_s3, 2048, %s47_s21, [#allocation6], %s587_s1, %s587_s1, %s588_s23  }
  0x25   :  { %s589_s26 = smov [#allocation8]  }
  0x26   :  { %s60_s27 = sshll.u32 %s589_s26, 4  ;;  %s61_s27 = int_to_ptr.vmem [resolvable:$true] %s60_s27 }
  0x27   :  { %s566_s0 = scalar_lea.vmem %s61_s27, 2048  ;;  %p571_p2 = scmp.lt.s32.totalorder %s61_s27, %s61_s27 }
  0x28   :  { %p567_p1 = scmp.ne.s32.totalorder %s61_s27, %s566_s0  ;;  %p572_p3 = scmp.lt.s32.totalorder %s566_s0, %s566_s0 }
  0x2a   :  { %p573_p4 = por %p572_p3, %p571_p2 }
  0x2c   :  { %p574_p5 = pnand %p573_p4, %p567_p1 }
  0x2e   :  { %577 = shalt.err (!%p574_p5)
}
  0x2f   :  { %66 = dma.hbm_to_vmem [thread:$0]  %s716_s5, 2048, %s61_s27, [#allocation9], %s587_s1, %s587_s1, %s588_s23  }
  0x30   :  { %578 = dma.done.wait [#allocation4], 128  }
  0x31   :  { %579 = vsyncadd [#allocation4], 4294967168 }
  0x32   :  { %580 = dma.done.wait [#allocation6], 2176  }
  0x33   :  { %581 = vsyncadd [#allocation6], 4294965120 }
  0x34   :  { %582 = dma.done.wait [#allocation9], 2048  }
  0x35   :  { %583 = vsyncadd [#allocation9], 4294965248  ;;  %v590_v1 = vmov 0   ;;  %v591_v2 = vmov 2   ;;  %v592_v3 = vmov 0.0   ;;  %v85_v4 = vld [vmem:[#allocation3] sm:$0xff] }
  0x36   :  { %492 = vset.pattern.permute.xlu0 %v590_v1  ;;  %494 = vset.pattern.permute.xlu1 %v591_v2  ;;  %v165_v5 = vld [vmem:[#allocation7 + $0x78] sm:$0xff]  ;;  %v164_v6 = vld [vmem:[#allocation7 + $0x70] sm:$0xff]  ;;  %v593_v7 = vmov 1   ;;  %v594_v8 = vmov 3   ;;  %v163_v9 = vld [vmem:[#allocation7 + $0x68] sm:$0xff]  ;;  %v595_v12 = vmov 4  }
  0x37   :  { %409 = vmatprep.subr.mxu0 %v592_v3  ;;  %444 = vmatprep.subr.mxu1 %v592_v3  ;;  %v162_v10 = vld [vmem:[#allocation7 + $0x60] sm:$0xff]  ;;  %v161_v11 = vld [vmem:[#allocation7 + $0x58] sm:$0xff]  ;;  %v160_v13 = vld [vmem:[#allocation7 + $0x50] sm:$0xff]  ;;  %vm596_vm0 = vmmov 0   ;;  %vm356_vm1 = vcmask 7168  }
  0x38   :  { %89 = vperm.xlu0 %492, %v85_v4   ;;  %118 = vperm.xlu1 %494, %v85_v4   ;;  %v159_v14 = vld [vmem:[#allocation7 + $0x48] sm:$0xff]  ;;  %v259_v15 = vld [vmem:[#allocation8 + $0x78] sm:$0xff]  ;;  %v258_v16 = vld [vmem:[#allocation8 + $0x70] sm:$0xff] }
  0x39   :  { %410 = vmatpush3.msra.mxu0 %v165_v5  ;;  %441 = vmatprep.mubr.msk.f32.mxu0 %vm596_vm0, %v592_v3  ;;  %v158_v17 = vld [vmem:[#allocation7 + $0x40] sm:$0xff]  ;;  %v257_v18 = vld [vmem:[#allocation8 + $0x68] sm:$0xff]  ;;  %v157_v19 = vld [vmem:[#allocation7 + $0x38] sm:$0xff] }
  0x3a   :  { %411 = vmatprep.subr.mxu0 %v592_v3  ;;  %476 = vmatprep.mubr.msk.f32.mxu1 %vm596_vm0, %v592_v3  ;;  %v256_v20 = vld [vmem:[#allocation8 + $0x60] sm:$0xff]  ;;  %v156_v21 = vld [vmem:[#allocation7 + $0x30] sm:$0xff]  ;;  %v255_v22 = vld [vmem:[#allocation8 + $0x58] sm:$0xff] }
  0x3b   :  { %412 = vmatpush3.msra.mxu0 %v164_v6  ;;  %445 = vmatpush3.msra.mxu1 %v259_v15  ;;  %v155_v23 = vld [vmem:[#allocation7 + $0x28] sm:$0xff]  ;;  %v254_v24 = vld [vmem:[#allocation8 + $0x50] sm:$0xff]  ;;  %v154_v25 = vld [vmem:[#allocation7 + $0x20] sm:$0xff] }
  0x3c   :  { %493 = vset.pattern.permute.xlu0 %v593_v7  ;;  %495 = vset.pattern.permute.xlu1 %v594_v8  ;;  %v253_v26 = vld [vmem:[#allocation8 + $0x48] sm:$0xff]  ;;  %v153_v27 = vld [vmem:[#allocation7 + $0x18] sm:$0xff]  ;;  %v252_v28 = vld [vmem:[#allocation8 + $0x40] sm:$0xff] }
  0x3d   :  { %107 = vperm.xlu0 %493, %v85_v4   ;;  %129 = vperm.xlu1 %495, %v85_v4   ;;  %v152_v29 = vld [vmem:[#allocation7 + $0x10] sm:$0xff]  ;;  %v251_v30 = vld [vmem:[#allocation8 + $0x38] sm:$0xff]  ;;  %v151_v31 = vld [vmem:[#allocation7 + $0x8] sm:$0xff] }
  0x3e   :  { %413 = vmatprep.subr.mxu0 %v592_v3  ;;  %446 = vmatprep.subr.mxu1 %v592_v3  ;;  %v250_v32 = vld [vmem:[#allocation8 + $0x30] sm:$0xff]  ;;  %v150_v33 = vld [vmem:[#allocation7] sm:$0xff]  ;;  %v249_v34 = vld [vmem:[#allocation8 + $0x28] sm:$0xff] }
  0x3f   :  { %414 = vmatpush3.msra.mxu0 %v163_v9  ;;  %447 = vmatpush3.msra.mxu1 %v258_v16  ;;  %v248_v35 = vld [vmem:[#allocation8 + $0x20] sm:$0xff]  ;;  %v247_v36 = vld [vmem:[#allocation8 + $0x18] sm:$0xff]  ;;  %v366_v41 = vld [vmem:[%s713_s2] ss:$0 sm:$0xff] }
  0x40   :  { %415 = vmatprep.subr.mxu0 %v592_v3  ;;  %448 = vmatprep.subr.mxu1 %v592_v3  ;;  %v365_v37 = vld [vmem:[#allocation5] ss:$0 sm:$0xff]  ;;  %v367_v42 = vld [vmem:[#allocation5 + $0x1] ss:$0 sm:$0xff]  ;;  %v368_v43 = vld [vmem:[#allocation5 + $0x2] ss:$0 sm:$0xff] }
  0x41   :  { %496 = vset.pattern.permute.xlu1 %v595_v12  ;;  %416 = vmatpush3.msra.mxu0 %v162_v10  ;;  %v369_v48 = vld [vmem:[#allocation5 + $0x3] ss:$0 sm:$0xff]  ;;  %v370_v51 = vld [vmem:[#allocation5 + $0x4] ss:$0 sm:$0xff]  ;;  %v246_v59 = vld [vmem:[#allocation8 + $0x10] sm:$0xff] }
  0x42   :  { %140 = vperm.xlu1 %496, %v85_v4   ;;  %417 = vmatprep.subr.mxu0 %v592_v3  ;;  %v245_v60 = vld [vmem:[#allocation8 + $0x8] sm:$0xff]  ;;  %v244_v61 = vld [vmem:[#allocation8] sm:$0xff] }
  0x43   :  { %418 = vmatpush3.msra.mxu0 %v161_v11  ;;  %497 = vset.pattern.permute.xlu0 %v595_v12  ;;  %v371_v62 = vld [vmem:[%s715_s4] ss:$0 sm:$0xff] }
  0x44   :  { %419 = vmatprep.subr.mxu0 %v592_v3  ;;  %449 = vmatpush3.msra.mxu1 %v257_v18  ;;  %v372_v4 = vld [vmem:[%s717_s6] ss:$0 sm:$0xff] }
  0x45   :  { %420 = vmatpush3.msra.mxu0 %v160_v13  ;;  %450 = vmatprep.subr.mxu1 %v592_v3  ;;  %v374_v10 = vld [vmem:[#allocation2] ss:$0 sm:$0xff] }
  0x46   :  { %421 = vmatprep.subr.mxu0 %v592_v3  ;;  %451 = vmatpush3.msra.mxu1 %v256_v20 }
  0x47   :  { %422 = vmatpush3.msra.mxu0 %v159_v14  ;;  %452 = vmatprep.subr.mxu1 %v592_v3 }
  0x48   :  { %423 = vmatprep.subr.mxu0 %v592_v3  ;;  %453 = vmatpush3.msra.mxu1 %v255_v22 }
  0x49   :  { %424 = vmatpush3.msra.mxu0 %v158_v17  ;;  %454 = vmatprep.subr.mxu1 %v592_v3 }
  0x4a   :  { %425 = vmatprep.subr.mxu0 %v592_v3  ;;  %455 = vmatpush3.msra.mxu1 %v254_v24 }
  0x4b   :  { %426 = vmatpush3.msra.mxu0 %v157_v19  ;;  %456 = vmatprep.subr.mxu1 %v592_v3 }
  0x4c   :  { %427 = vmatprep.subr.mxu0 %v592_v3  ;;  %457 = vmatpush3.msra.mxu1 %v253_v26 }
  0x4d   :  { %428 = vmatpush3.msra.mxu0 %v156_v21  ;;  %458 = vmatprep.subr.mxu1 %v592_v3 }
  0x4e   :  { %429 = vmatprep.subr.mxu0 %v592_v3  ;;  %459 = vmatpush3.msra.mxu1 %v252_v28 }
  0x4f   :  { %430 = vmatpush3.msra.mxu0 %v155_v23  ;;  %460 = vmatprep.subr.mxu1 %v592_v3 }
  0x50   :  { %431 = vmatprep.subr.mxu0 %v592_v3  ;;  %461 = vmatpush3.msra.mxu1 %v251_v30 }
  0x51   :  { %432 = vmatpush3.msra.mxu0 %v154_v25  ;;  %462 = vmatprep.subr.mxu1 %v592_v3 }
  0x52   :  { %433 = vmatprep.subr.mxu0 %v592_v3  ;;  %463 = vmatpush3.msra.mxu1 %v250_v32 }
  0x53   :  { %434 = vmatpush3.msra.mxu0 %v153_v27  ;;  %464 = vmatprep.subr.mxu1 %v592_v3 }
  0x54   :  { %435 = vmatprep.subr.mxu0 %v592_v3  ;;  %465 = vmatpush3.msra.mxu1 %v249_v34 }
  0x55   :  { %436 = vmatpush3.msra.mxu0 %v152_v29  ;;  %466 = vmatprep.subr.mxu1 %v592_v3 }
  0x56   :  { %437 = vmatprep.subr.mxu0 %v592_v3  ;;  %467 = vmatpush3.msra.mxu1 %v248_v35 }
  0x57   :  { %438 = vmatpush3.msra.mxu0 %v151_v31  ;;  %468 = vmatprep.subr.mxu1 %v592_v3 }
  0x58   :  { %439 = vmatprep.subr.mxu0 %v592_v3  ;;  %469 = vmatpush3.msra.mxu1 %v247_v36 }
  0x59   :  { %440 = vmatpush3.msra.mxu0 %v150_v33  ;;  %470 = vmatprep.subr.mxu1 %v592_v3 }
  0x5a   :  { %471 = vmatpush3.msra.mxu1 %v246_v59 }
  0x5b   :  { %472 = vmatprep.subr.mxu1 %v592_v3 }
  0x5c   :  { %473 = vmatpush3.msra.mxu1 %v245_v60 }
  0x5d   :  { %474 = vmatprep.subr.mxu1 %v592_v3  ;;  %v373_v3 = vld [vmem:[%s718_s7] ss:$0 sm:$0xff] }
  0x5e   :  { %475 = vmatpush3.msra.mxu1 %v244_v61 }
  0xb3   :  { %v90_v38 = vpop.permute.xlu0 %89  ;;  %v119_v39 = vpop.permute.xlu1 %118 }
  0xb4   :  { %v96_v40 = vmul.f32 %v365_v37, %v90_v38  ;;  %v125_v49 = vmul.f32 %v368_v43, %v119_v39 }
  0xb6   :  { %v104_v46 = vadd.f32 %v366_v41, %v96_v40 }
  0xb8   :  { %v108_v44 = vpop.permute.xlu0 %107  ;;  %v130_v45 = vpop.permute.xlu1 %129 }
  0xb9   :  { %v114_v47 = vmul.f32 %v367_v42, %v108_v44  ;;  %v136_v53 = vmul.f32 %v369_v48, %v130_v45 }
  0xbb   :  { %v115_v50 = vadd.f32 %v114_v47, %v104_v46 }
  0xbd   :  { %v126_v52 = vadd.f32 %v125_v49, %v115_v50  ;;  %v141_v54 = vpop.permute.xlu1 %140 }
  0xbe   :  { %v147_v55 = vmul.f32 %v370_v51, %v141_v54 }
  0xbf   :  { %v137_v56 = vadd.f32 %v136_v53, %v126_v52 }
  0xc1   :  { %v148_v57 = vadd.f32 %v147_v55, %v137_v56 }
  0xc3   :  { %v149_v58 = vmax.f32 %v148_v57, 0.0 }
  0xc5   :  { %442 = vmatmul.mubr.f32.vlgmr.msra.gmra.mxu0 %v149_v58 }
 0x185   :  { %v239_v63 = vpop.f32.mrf.mxu0 }
 0x186   :  { %v240_v0 = vadd.f32 %v371_v62, %v239_v63 }
 0x187   :  { %v443_v1 = vpop.f32.mrf.mxu0 }
 0x188   :  { %v243_v2 = vmax.f32 %v240_v0, 0.0 }
 0x18a   :  { %477 = vmatmul.mubr.f32.vlgmr.msra.gmra.mxu1 %v243_v2 }
 0x24a   :  { %v333_v5 = vpop.f32.mrf.mxu1 }
 0x24b   :  { %v334_v6 = vadd.f32 %v372_v4, %v333_v5 }
 0x24c   :  { %v478_v7 = vpop.f32.mrf.mxu1 }
 0x24d   :  { %v337_v8 = vmax.f32 %v334_v6, 0.0 }
 0x24f   :  { %v345_v9 = vmul.f32 %v373_v3, %v337_v8 }
 0x251   :  { %346 = vadd.xlane.f32.xlu0 %v345_v9 }
 0x2da   :  { %v347_v11 = vpop.xlane.xlu0 %346 }
 0x2db   :  { %v355_v12 = vadd.f32 %v374_v10, %v347_v11 }
 0x2dd   :  { %357 = vst.msk [vmem:[%s720_s9] sm:$0xff] %vm356_vm1, %v355_v12 }
 0x2de   :  { %362 = vsyncpa [#allocation4], 1 }
 0x2df   :  { %363 = vsyncpa [#allocation6], 1 }
 0x2e0   :  { %364 = vsyncpa [#allocation9], 1 }

</bundles_post_ra>
